<compile_context>
chip_gen: v7x
topology: tpu7x:2x2x1
jax: 0.10.0
libtpu: 0.0.40
codegen_flags: <defaults>
</compile_context>

<pallas_src>
import functools

import jax
import jax.numpy as jnp
from jax.experimental import pallas as pl
from jax.experimental.pallas import tpu as pltpu


def _transe_kernel(sub_ref, rel_ref, ent_t_ref, out_ref, *, gamma):
    # obj = sub_emb + rel_emb : tiny (B, D) add, recomputed per grid step.
    q = sub_ref[...].astype(jnp.float32) + rel_ref[...].astype(jnp.float32)  # (B, D)

    ent_t = ent_t_ref[...].astype(jnp.float32)                               # (D, TE)

    # L1 distance: dist[b, e] = sum_d | q[b, d] - ent_t[d, e] |
    # Intermediate is (B, D, TE) with (D, TE) as the (sublane, lane) dims ->
    # lane-dense, reduction over the sublane axis.
    diff = jnp.abs(q[:, :, None] - ent_t[None, :, :])                        # (B, D, TE)
    dist = jnp.sum(diff, axis=1)                                             # (B, TE)

    out_ref[...] = jax.nn.sigmoid(gamma - dist).astype(out_ref.dtype)


def transe_forward(sub_emb, rel_emb, ent_embed, gamma, *, block_e=512):
    """sub_emb, rel_emb: (B, D); ent_embed: (E, D); gamma: python float -> (B, E)."""
    B, D = sub_emb.shape
    E, _ = ent_embed.shape

    # Lane-dense layout for the dominant stream: (D, E).  In a real deployment
    # this transpose is done once at parameter-load time, not per call.
    ent_t = jnp.transpose(ent_embed)                                         # (D, E)

    # Tile size over entities: multiple of 128 lanes, capped by (padded) E.
    e_lane = 128 * pl.cdiv(E, 128)
    te = min(block_e, e_lane)
    e_pad = te * pl.cdiv(e_lane, te)
    if e_pad != E:
        ent_t = jnp.pad(ent_t, ((0, 0), (0, e_pad - E)))

    grid = (e_pad // te,)
    kernel = functools.partial(_transe_kernel, gamma=float(gamma))

    out = pl.pallas_call(
        kernel,
        out_shape=jax.ShapeDtypeStruct((B, e_pad), jnp.float32),
        grid_spec=pltpu.PrefetchScalarGridSpec(
            num_scalar_prefetch=0,
            grid=grid,
            in_specs=[
                pl.BlockSpec((B, D), lambda j: (0, 0)),   # sub_emb (resident)
                pl.BlockSpec((B, D), lambda j: (0, 0)),   # rel_emb (resident)
                pl.BlockSpec((D, te), lambda j: (0, j)),  # entity table, lane-dense tile
            ],
            out_specs=pl.BlockSpec((B, te), lambda j: (0, j)),
        ),
        compiler_params=pltpu.CompilerParams(
            dimension_semantics=("parallel",),
        ),
    )(sub_emb, rel_emb, ent_t)

    return out[:, :E]


if __name__ == "__main__":
    # Small shapes consistent with the module's __init__ / forward.
    num_ent = 300          # deliberately not a multiple of 128 to exercise padding
    num_rel = 8            # rel_embed has num_rel * 2 rows
    embed_dim = 32
    batch = 8
    gamma = 9.0            # self.p.gamma

    key = jax.random.PRNGKey(0)
    k_ent, k_rel, k_sub, k_relidx = jax.random.split(key, 4)

    ent_embed = jax.random.normal(k_ent, (num_ent, embed_dim), jnp.float32) * 0.1
    rel_embed = jax.random.normal(k_rel, (num_rel * 2, embed_dim), jnp.float32) * 0.1

    # Example batch of (sub, rel) index pairs.
    sub = jax.random.randint(k_sub, (batch,), 0, num_ent)
    rel = jax.random.randint(k_relidx, (batch,), 0, num_rel * 2)

    # Glue: embedding gathers in plain JAX (no clean gain from doing them in-kernel).
    sub_emb = ent_embed[sub]       # (B, D)
    rel_emb = rel_embed[rel]       # (B, D)

    pred = transe_forward(sub_emb, rel_emb, ent_embed, gamma)
    pred = jax.block_until_ready(pred)

    # Pure-JAX reference check (matches the PyTorch forward).
    obj = sub_emb + rel_emb
    ref = jax.nn.sigmoid(
        gamma - jnp.sum(jnp.abs(obj[:, None, :] - ent_embed[None, :, :]), axis=-1)
    )
    assert pred.shape == (batch, num_ent)
    assert jnp.allclose(pred, ref, atol=1e-5, rtol=1e-5)

    print("KERNEL_OK")
</pallas_src>

<mosaic_0001>
module attributes {stable_mosaic.version = 11 : i64} {
  func.func @_transe_kernel(%arg0: i32, %arg1: memref<8x32xf32, #tpu.memory_space<vmem>>, %arg2: memref<8x32xf32, #tpu.memory_space<vmem>>, %arg3: memref<32x384xf32, #tpu.memory_space<vmem>>, %arg4: memref<8x384xf32, #tpu.memory_space<vmem>>) attributes {dimension_semantics = [#tpu.dimension_semantics<parallel>], iteration_bounds = array<i64: 1>, scalar_prefetch = 0 : i64, scratch_operands = 0 : i64, tpu.core_type = #tpu.core_type<tc>, window_params = [{pipeline_mode = #tpu.pipeline_mode<synchronous>, transform_indices = @transform_0, window_bounds = array<i64: 8, 32>}, {pipeline_mode = #tpu.pipeline_mode<synchronous>, transform_indices = @transform_1, window_bounds = array<i64: 8, 32>}, {transform_indices = @transform_2, window_bounds = array<i64: 32, 384>}, {transform_indices = @transform_3, window_bounds = array<i64: 8, 384>}]} {
    %c0 = arith.constant 0 : index
    %c0_0 = arith.constant 0 : index
    %0 = vector.load %arg1[%c0, %c0_0] : memref<8x32xf32, #tpu.memory_space<vmem>>, vector<8x32xf32>
    %c0_1 = arith.constant 0 : index
    %c0_2 = arith.constant 0 : index
    %1 = vector.load %arg2[%c0_1, %c0_2] : memref<8x32xf32, #tpu.memory_space<vmem>>, vector<8x32xf32>
    %2 = arith.addf %0, %1 : vector<8x32xf32>
    %c0_3 = arith.constant 0 : index
    %c0_4 = arith.constant 0 : index
    %3 = vector.load %arg3[%c0_3, %c0_4] : memref<32x384xf32, #tpu.memory_space<vmem>>, vector<32x384xf32>
    %4 = vector.shape_cast %2 : vector<8x32xf32> to vector<8x32x1xf32>
    %5 = vector.shape_cast %3 : vector<32x384xf32> to vector<1x32x384xf32>
    %6 = vector.broadcast %4 : vector<8x32x1xf32> to vector<8x32x384xf32>
    %7 = vector.broadcast %5 : vector<1x32x384xf32> to vector<8x32x384xf32>
    %8 = arith.subf %6, %7 : vector<8x32x384xf32>
    %9 = math.absf %8 : vector<8x32x384xf32>
    %cst = arith.constant dense<0.000000e+00> : vector<8x384xf32>
    %10 = vector.multi_reduction <add>, %9, %cst [1] : vector<8x32x384xf32> to vector<8x384xf32>
    %cst_5 = arith.constant 9.000000e+00 : f32
    %11 = vector.broadcast %cst_5 : f32 to vector<8x384xf32>
    %12 = arith.subf %11, %10 : vector<8x384xf32>
    %13 = arith.negf %12 : vector<8x384xf32>
    %14 = math.exp %13 : vector<8x384xf32>
    %cst_6 = arith.constant 1.000000e+00 : f32
    %15 = vector.broadcast %cst_6 : f32 to vector<8x384xf32>
    %16 = arith.addf %15, %14 : vector<8x384xf32>
    %17 = arith.divf %15, %16 : vector<8x384xf32>
    %c0_7 = arith.constant 0 : index
    %c0_8 = arith.constant 0 : index
    %18 = vector.load %arg4[%c0_7, %c0_8] : memref<8x384xf32, #tpu.memory_space<vmem>>, vector<8x384xf32>
    tpu.vector_store %arg4[%c0_7, %c0_8], %17 {strides = array<i32>} : memref<8x384xf32, #tpu.memory_space<vmem>>, vector<8x384xf32>,
    return
  }
  func.func @transform_0(%arg0: i32) -> (i32, i32) {
    %c0_i32 = arith.constant 0 : i32
    %c0_i32_0 = arith.constant 0 : i32
    %c0_i32_1 = arith.constant 0 : i32
    return %c0_i32, %c0_i32_0 : i32, i32
  }
  func.func @transform_1(%arg0: i32) -> (i32, i32) {
    %c0_i32 = arith.constant 0 : i32
    %c0_i32_0 = arith.constant 0 : i32
    %c0_i32_1 = arith.constant 0 : i32
    return %c0_i32, %c0_i32_0 : i32, i32
  }
  func.func @transform_2(%arg0: i32) -> (i32, i32) {
    %c0_i32 = arith.constant 0 : i32
    %c0_i32_0 = arith.constant 0 : i32
    return %c0_i32, %arg0 : i32, i32
  }
  func.func @transform_3(%arg0: i32) -> (i32, i32) {
    %c0_i32 = arith.constant 0 : i32
    %c0_i32_0 = arith.constant 0 : i32
    return %c0_i32, %arg0 : i32, i32
  }
}

</mosaic_0001>

<bundles_post_ra>
// kernel: tpu_custom_call.1
= control target key start
LH: loop header
LB: loop body
LE: loop exit
PB: predicated region body
PF: predicated region fallthrough
CT: control target
= control target key end

     0   :  { %8 = vsyncpa [#allocation3], 0  ;;  %s1451_s0 = inlined_call_operand.hbm [shape: f32[8,32], index: 0, kind: input, shape index: {}]   ;;  %s1452_s1 = inlined_call_operand.hbm [shape: f32[8,32], index: 1, kind: input, shape index: {}]   ;;  %s1453_s2 = inlined_call_operand.hbm [shape: f32[32,384], index: 2, kind: input, shape index: {}]   ;;  %s1454_s3 = inlined_call_operand.hbm [shape: f32[8,384], index: 3, kind: output, shape index: {}]  }
   0x1   :  { %9 = vsyncpa [#allocation6], 0 }
   0x2   :  { %10 = vsyncpa [#allocation4], 0  ;;  %s1089_s12 = smov [#allocation5]   ;;  %s1090_s14 = smov [#allocation2]  }
   0x3   :  { %s27_s13 = sshll.u32 %s1089_s12, 4  ;;  %s17_s15 = sshll.u32 %s1090_s14, 4  ;;  %s28_s13 = int_to_ptr.vmem [resolvable:$true] %s27_s13  ;;  %s18_s15 = int_to_ptr.vmem [resolvable:$true] %s17_s15 }
   0x4   :  { %s995_s18 = scalar_lea.hbm %s1452_s1, 128 }
   0x5   :  { %p996_p0 = scmp.ne.s32.totalorder %s1452_s1, %s995_s18  ;;  %p999_p1 = scmp.lt.u32.totalorder %s995_s18, %s1452_s1 }
   0x7   :  { %p1001_p2 = pnand %p999_p1, %p996_p0 }
   0x9   :  { %1004 = shalt.err (!%p1001_p2)
}
   0xa   :  { %s1005_s23 = scalar_lea.vmem %s28_s13, 128  ;;  %p1010_p4 = scmp.lt.s32.totalorder %s28_s13, %s28_s13 }
   0xb   :  { %p1006_p3 = scmp.ne.s32.totalorder %s28_s13, %s1005_s23  ;;  %p1011_p5 = scmp.lt.s32.totalorder %s1005_s23, %s1005_s23 }
   0xd   :  { %p1012_p6 = por %p1011_p5, %p1010_p4 }
   0xf   :  { %p1013_p7 = pnand %p1012_p6, %p1006_p3 }
  0x11   :  { %1016 = shalt.err (!%p1013_p7)
}
  0x12   :  { %30 = dma.hbm_to_vmem [thread:$0]  %s1452_s1, 128, %s28_s13, [#allocation6]  }
  0x13   :  { %s1017_s28 = scalar_lea.hbm %s1451_s0, 128 }
  0x14   :  { %p1018_p8 = scmp.ne.s32.totalorder %s1451_s0, %s1017_s28  ;;  %p1021_p9 = scmp.lt.u32.totalorder %s1017_s28, %s1451_s0 }
  0x16   :  { %p1023_p10 = pnand %p1021_p9, %p1018_p8 }
  0x18   :  { %1026 = shalt.err (!%p1023_p10)
}
  0x19   :  { %s1027_s6 = scalar_lea.vmem %s18_s15, 128  ;;  %p1032_p12 = scmp.lt.s32.totalorder %s18_s15, %s18_s15 }
  0x1a   :  { %p1028_p11 = scmp.ne.s32.totalorder %s18_s15, %s1027_s6  ;;  %p1033_p13 = scmp.lt.s32.totalorder %s1027_s6, %s1027_s6 }
  0x1c   :  { %p1034_p0 = por %p1033_p13, %p1032_p12 }
  0x1e   :  { %p1035_p1 = pnand %p1034_p0, %p1028_p11 }
  0x20   :  { %1038 = shalt.err (!%p1035_p1)
}
  0x21   :  { %20 = dma.hbm_to_vmem [thread:$0]  %s1451_s0, 128, %s18_s15, [#allocation3]  }
  0x22   :  { %s1091_s8 = smov [#allocation7]   ;;  %s1039_s12 = scalar_lea.hbm %s1453_s2, 1536 }
  0x23   :  { %s36_s9 = sshll.u32 %s1091_s8, 4  ;;  %p1040_p2 = scmp.ne.s32.totalorder %s1453_s2, %s1039_s12  ;;  %s37_s9 = int_to_ptr.vmem [resolvable:$true] %s36_s9 }
  0x24   :  { %p1043_p3 = scmp.lt.u32.totalorder %s1039_s12, %s1453_s2 }
  0x26   :  { %p1045_p4 = pnand %p1043_p3, %p1040_p2 }
  0x28   :  { %1048 = shalt.err (!%p1045_p4)
}
  0x29   :  { %s1049_s18 = scalar_lea.vmem %s37_s9, 1536  ;;  %p1054_p6 = scmp.lt.s32.totalorder %s37_s9, %s37_s9 }
  0x2a   :  { %p1050_p5 = scmp.ne.s32.totalorder %s37_s9, %s1049_s18  ;;  %p1055_p7 = scmp.lt.s32.totalorder %s1049_s18, %s1049_s18 }
  0x2c   :  { %p1056_p8 = por %p1055_p7, %p1054_p6 }
  0x2e   :  { %p1057_p9 = pnand %p1056_p8, %p1050_p5 }
  0x30   :  { %1060 = shalt.err (!%p1057_p9)
}
  0x31   :  { %s1092_s0 = smov 384   ;;  %s1093_s15 = smov 24  }
  0x32   :  { %42 = dma.hbm_to_vmem [thread:$0]  %s1453_s2, 1536, %s37_s9, [#allocation6], %s1092_s0, %s1092_s0, %s1093_s15  }
  0x33   :  { %1083 = dma.done.wait [#allocation3], 128  }
  0x34   :  { %1084 = vsyncadd [#allocation3], 4294967168 }
  0x35   :  { %1085 = dma.done.wait [#allocation6], 1664  }
  0x36   :  { %1086 = vsyncadd [#allocation6], 4294965632  ;;  %v67_v0 = vlaneseq  ;;  %v52_v4 = vld [vmem:[#allocation2] sm:$0xff]  ;;  %v53_v5 = vld [vmem:[#allocation5] sm:$0xff]  ;;  %vm819_vm0 = vcmask 1041409   ;;  %vm821_vm1 = vcmask 1042434  }
  0x37   :  { %v54_v6 = vadd.f32 %v53_v5, %v52_v4  ;;  %v1151_v25 = vld [vmem:[#allocation7] sm:$0xff]  ;;  %v1153_v26 = vld [vmem:[#allocation7 + $0x8] sm:$0xff]  ;;  %v1155_v27 = vld [vmem:[#allocation7 + $0x10] sm:$0xff]  ;;  %vm823_vm2 = vcmask 1043459   ;;  %vm825_vm3 = vcmask 1044484   ;;  %vm827_vm4 = vcmask 1045509  }
  0x38   :  { %v68_v1 = vshrl.u32 %v67_v0, 7  ;;  %v1161_v34 = vld [vmem:[#allocation7 + $0x18] sm:$0xff]  ;;  %v1163_v35 = vld [vmem:[#allocation7 + $0x20] sm:$0xff]  ;;  %v1166_v37 = vld [vmem:[#allocation7 + $0x28] sm:$0xff]  ;;  %vm829_vm5 = vcmask 1046534   ;;  %vm831_vm6 = vcmask 1047559  }
  0x39   :  { %v1176_v53 = vld [vmem:[#allocation7 + $0x30] sm:$0xff]  ;;  %v1178_v54 = vld [vmem:[#allocation7 + $0x38] sm:$0xff]  ;;  %s1094_s2 = smov [#allocation8]  }
  0x3a   :  { %v88_v2 = vsub.s32 1, %v68_v1  ;;  %v69_v3 = vsub.s32 0, %v68_v1  ;;  %v107_v9 = vsub.s32 2, %v68_v1  ;;  %v126_v11 = vsub.s32 3, %v68_v1  ;;  %s859_s21 = sshll.u32 %s1094_s2, 4  ;;  %s860_s21 = int_to_ptr.vmem [resolvable:$true] %s859_s21 }
  0x3b   :  { %v145_v13 = vsub.s32 4, %v68_v1  ;;  %v164_v15 = vsub.s32 5, %v68_v1  ;;  %v183_v17 = vsub.s32 6, %v68_v1  ;;  %v202_v19 = vsub.s32 7, %v68_v1  ;;  %s1061_s22 = scalar_lea.vmem %s860_s21, 384  ;;  %p1066_p11 = scmp.lt.s32.totalorder %s860_s21, %s860_s21 }
  0x3c   :  { %v89_v7 = vrot.slane %v54_v6, %v88_v2  ;;  %v70_v8 = vrot.slane %v54_v6, %v69_v3  ;;  %v108_v10 = vrot.slane %v54_v6, %v107_v9  ;;  %v127_v12 = vrot.slane %v54_v6, %v126_v11  ;;  %v1187_v3 = vld [vmem:[#allocation7 + $0x40] sm:$0xff]  ;;  %p1062_p10 = scmp.ne.s32.totalorder %s860_s21, %s1061_s22  ;;  %p1067_p12 = scmp.lt.s32.totalorder %s1061_s22, %s1061_s22 }
  0x3d   :  { %v146_v14 = vrot.slane %v54_v6, %v145_v13  ;;  %v165_v16 = vrot.slane %v54_v6, %v164_v15  ;;  %v184_v18 = vrot.slane %v54_v6, %v183_v17  ;;  %v203_v20 = vrot.slane %v54_v6, %v202_v19 }
  0x3e   :  { %91 = vbcast.lane.b32.xlu1 %v89_v7, 256  ;;  %72 = vbcast.lane.b32.xlu0 %v70_v8, 256  ;;  %p1068_p13 = por %p1067_p12, %p1066_p11 }
  0x40   :  { %p1069_p0 = pnand %p1068_p13, %p1062_p10 }
  0x42   :  { %95 = vbcast.lane.b32.xlu1 %v89_v7, 264  ;;  %76 = vbcast.lane.b32.xlu0 %v70_v8, 264 }
  0x46   :  { %114 = vbcast.lane.b32.xlu1 %v108_v10, 264  ;;  %110 = vbcast.lane.b32.xlu0 %v108_v10, 256 }
  0x4a   :  { %99 = vbcast.lane.b32.xlu1 %v89_v7, 272  ;;  %80 = vbcast.lane.b32.xlu0 %v70_v8, 272 }
  0x4e   :  { %133 = vbcast.lane.b32.xlu1 %v127_v12, 264  ;;  %129 = vbcast.lane.b32.xlu0 %v127_v12, 256 }
  0x52   :  { %148 = vbcast.lane.b32.xlu1 %v146_v14, 256  ;;  %118 = vbcast.lane.b32.xlu0 %v108_v10, 272 }
  0x56   :  { %84 = vbcast.lane.b32.xlu1 %v70_v8, 280  ;;  %152 = vbcast.lane.b32.xlu0 %v146_v14, 264 }
  0x5a   :  { %137 = vbcast.lane.b32.xlu1 %v127_v12, 272  ;;  %103 = vbcast.lane.b32.xlu0 %v89_v7, 280 }
  0x5e   :  { %171 = vbcast.lane.b32.xlu1 %v165_v16, 264  ;;  %167 = vbcast.lane.b32.xlu0 %v165_v16, 256 }
  0x62   :  { %156 = vbcast.lane.b32.xlu1 %v146_v14, 272  ;;  %122 = vbcast.lane.b32.xlu0 %v108_v10, 280 }
  0x66   :  { %190 = vbcast.lane.b32.xlu1 %v184_v18, 264  ;;  %186 = vbcast.lane.b32.xlu0 %v184_v18, 256 }
  0x6a   :  { %175 = vbcast.lane.b32.xlu1 %v165_v16, 272  ;;  %141 = vbcast.lane.b32.xlu0 %v127_v12, 280 }
  0x6e   :  { %209 = vbcast.lane.b32.xlu1 %v203_v20, 264  ;;  %205 = vbcast.lane.b32.xlu0 %v203_v20, 256 }
  0x72   :  { %194 = vbcast.lane.b32.xlu1 %v184_v18, 272  ;;  %160 = vbcast.lane.b32.xlu0 %v146_v14, 280 }
  0x76   :  { %213 = vbcast.lane.b32.xlu1 %v203_v20, 272  ;;  %179 = vbcast.lane.b32.xlu0 %v165_v16, 280 }
  0x7a   :  { %217 = vbcast.lane.b32.xlu1 %v203_v20, 280  ;;  %198 = vbcast.lane.b32.xlu0 %v184_v18, 280 }
  0xb0   :  { %v92_v21 = vpop.permute.xlu1 %91  ;;  %v73_v22 = vpop.permute.xlu0 %72 }
  0xb1   :  { %v231_v28 = vsub.f32 %v92_v21, %v1151_v25  ;;  %v232_v29 = vsub.f32 %v92_v21, %v1153_v26  ;;  %v233_v32 = vsub.f32 %v92_v21, %v1155_v27  ;;  %v219_v33 = vsub.f32 %v73_v22, %v1151_v25 }
  0xb2   :  { %v220_v36 = vsub.f32 %v73_v22, %v1153_v26  ;;  %v221_v38 = vsub.f32 %v73_v22, %v1155_v27 }
  0xb3   :  { %v327_v39 = vand.u32 2147483647, %v231_v28  ;;  %v328_v40 = vand.u32 2147483647, %v232_v29  ;;  %v329_v45 = vand.u32 2147483647, %v233_v32 }
  0xb4   :  { %v96_v23 = vpop.permute.xlu1 %95  ;;  %v77_v24 = vpop.permute.xlu0 %76  ;;  %v315_v46 = vand.u32 2147483647, %v219_v33  ;;  %v316_v49 = vand.u32 2147483647, %v220_v36  ;;  %v317_v55 = vand.u32 2147483647, %v221_v38 }
  0xb5   :  { %v234_v41 = vsub.f32 %v96_v23, %v1161_v34  ;;  %v235_v42 = vsub.f32 %v96_v23, %v1163_v35  ;;  %v236_v47 = vsub.f32 %v96_v23, %v1166_v37  ;;  %v222_v48 = vsub.f32 %v77_v24, %v1161_v34 }
  0xb6   :  { %v223_v50 = vsub.f32 %v77_v24, %v1163_v35  ;;  %v224_v51 = vsub.f32 %v77_v24, %v1166_v37 }
  0xb7   :  { %v330_v59 = vand.u32 2147483647, %v234_v41  ;;  %v331_v60 = vand.u32 2147483647, %v235_v42  ;;  %v332_v1 = vand.u32 2147483647, %v236_v47 }
  0xb8   :  { %v115_v30 = vpop.permute.xlu1 %114  ;;  %v111_v31 = vpop.permute.xlu0 %110  ;;  %v318_v2 = vand.u32 2147483647, %v222_v48  ;;  %v319_v6 = vand.u32 2147483647, %v223_v50  ;;  %v320_v7 = vand.u32 2147483647, %v224_v51 }
  0xb9   :  { %v246_v52 = vsub.f32 %v115_v30, %v1161_v34  ;;  %v247_v56 = vsub.f32 %v115_v30, %v1163_v35  ;;  %v243_v57 = vsub.f32 %v111_v31, %v1151_v25  ;;  %v244_v58 = vsub.f32 %v111_v31, %v1153_v26  ;;  %v1205_v41 = vld [vmem:[#allocation7 + $0x50] sm:$0xff]  ;;  %v1207_v42 = vld [vmem:[#allocation7 + $0x58] sm:$0xff] }
  0xba   :  { %v248_v61 = vsub.f32 %v115_v30, %v1166_v37  ;;  %v245_v62 = vsub.f32 %v111_v31, %v1155_v27  ;;  %v438_v20 = vadd.f32 %v330_v59, %v327_v39  ;;  %v447_v21 = vadd.f32 %v331_v60, %v328_v40  ;;  %v1199_v31 = vld [vmem:[#allocation7 + $0x48] sm:$0xff] }
  0xbb   :  { %v342_v8 = vand.u32 2147483647, %v246_v52  ;;  %v343_v10 = vand.u32 2147483647, %v247_v56  ;;  %v339_v11 = vand.u32 2147483647, %v243_v57  ;;  %v456_v24 = vadd.f32 %v332_v1, %v329_v45 }
  0xbc   :  { %v100_v43 = vpop.permute.xlu1 %99  ;;  %v81_v44 = vpop.permute.xlu0 %80  ;;  %v340_v12 = vand.u32 2147483647, %v244_v58  ;;  %v344_v14 = vand.u32 2147483647, %v248_v61  ;;  %v341_v15 = vand.u32 2147483647, %v245_v62  ;;  %v411_v28 = vadd.f32 %v318_v2, %v315_v46 }
  0xbd   :  { %v237_v4 = vsub.f32 %v100_v43, %v1176_v53  ;;  %v238_v5 = vsub.f32 %v100_v43, %v1178_v54  ;;  %v225_v9 = vsub.f32 %v81_v44, %v1176_v53  ;;  %v226_v13 = vsub.f32 %v81_v44, %v1178_v54 }
  0xbe   :  { %v239_v16 = vsub.f32 %v100_v43, %v1187_v3  ;;  %v227_v17 = vsub.f32 %v81_v44, %v1187_v3  ;;  %v420_v29 = vadd.f32 %v319_v6, %v316_v49  ;;  %v429_v32 = vadd.f32 %v320_v7, %v317_v55 }
  0xbf   :  { %v333_v22 = vand.u32 2147483647, %v237_v4  ;;  %v334_v23 = vand.u32 2147483647, %v238_v5  ;;  %v321_v30 = vand.u32 2147483647, %v225_v9  ;;  %v1201_v33 = vadd.f32 %v342_v8, %v339_v11 }
  0xc0   :  { %v134_v63 = vpop.permute.xlu1 %133  ;;  %v1185_v0 = vpop.permute.xlu0 %129  ;;  %v1203_v36 = vadd.f32 %v343_v10, %v340_v12  ;;  %v322_v38 = vand.u32 2147483647, %v226_v13  ;;  %v1209_v39 = vadd.f32 %v344_v14, %v341_v15  ;;  %v335_v40 = vand.u32 2147483647, %v239_v16 }
  0xc1   :  { %v323_v43 = vand.u32 2147483647, %v227_v17  ;;  %v258_v44 = vsub.f32 %v134_v63, %v1161_v34  ;;  %v439_v47 = vadd.f32 %v438_v20, %v333_v22  ;;  %v448_v48 = vadd.f32 %v447_v21, %v334_v23 }
  0xc2   :  { %v259_v49 = vsub.f32 %v134_v63, %v1163_v35  ;;  %v412_v51 = vadd.f32 %v411_v28, %v321_v30  ;;  %v260_v52 = vsub.f32 %v134_v63, %v1166_v37  ;;  %v421_v57 = vadd.f32 %v420_v29, %v322_v38 }
  0xc3   :  { %v255_v58 = vsub.f32 %v1185_v0, %v1151_v25  ;;  %v256_v59 = vsub.f32 %v1185_v0, %v1153_v26  ;;  %v430_v61 = vadd.f32 %v429_v32, %v323_v43  ;;  %v354_v62 = vand.u32 2147483647, %v258_v44 }
  0xc4   :  { %v1195_v18 = vpop.permute.xlu1 %148  ;;  %v1197_v19 = vpop.permute.xlu0 %118  ;;  %v355_v4 = vand.u32 2147483647, %v259_v49  ;;  %v257_v63 = vsub.f32 %v1185_v0, %v1155_v27  ;;  %v1227_v7 = vand.u32 2147483647, %v260_v52  ;;  %v457_v12 = vadd.f32 %v456_v24, %v335_v40 }
  0xc5   :  { %v267_v5 = vsub.f32 %v1195_v18, %v1151_v25  ;;  %v268_v8 = vsub.f32 %v1195_v18, %v1153_v26  ;;  %v351_v13 = vand.u32 2147483647, %v255_v58  ;;  %v352_v14 = vand.u32 2147483647, %v256_v59 }
  0xc6   :  { %v269_v16 = vsub.f32 %v1195_v18, %v1155_v27  ;;  %v249_v0 = vsub.f32 %v1197_v19, %v1176_v53  ;;  %v353_v21 = vand.u32 2147483647, %v257_v63  ;;  %v250_v18 = vsub.f32 %v1197_v19, %v1178_v54 }
  0xc7   :  { %v1235_v22 = vand.u32 2147483647, %v267_v5  ;;  %v1238_v29 = vand.u32 2147483647, %v268_v8  ;;  %v1241_v38 = vadd.f32 %v354_v62, %v351_v13 }
  0xc8   :  { %v85_v45 = vpop.permute.xlu1 %84  ;;  %v1212_v46 = vpop.permute.xlu0 %152  ;;  %v365_v52 = vand.u32 2147483647, %v269_v16  ;;  %v345_v8 = vand.u32 2147483647, %v249_v0 }
  0xc9   :  { %v228_v50 = vsub.f32 %v85_v45, %v1199_v31  ;;  %v229_v55 = vsub.f32 %v85_v45, %v1205_v41  ;;  %v230_v56 = vsub.f32 %v85_v45, %v1207_v42 }
  0xcb   :  { %v324_v60 = vand.u32 2147483647, %v228_v50  ;;  %v325_v1 = vand.u32 2147483647, %v229_v55  ;;  %v326_v2 = vand.u32 2147483647, %v230_v56 }
  0xcc   :  { %v104_v11 = vpop.permute.xlu0 %103 }
  0xcd   :  { %v413_v6 = vadd.f32 %v412_v51, %v324_v60  ;;  %v422_v9 = vadd.f32 %v421_v57, %v325_v1  ;;  %v431_v10 = vadd.f32 %v430_v61, %v326_v2  ;;  %v240_v28 = vsub.f32 %v104_v11, %v1199_v31 }
  0xce   :  { %v241_v32 = vsub.f32 %v104_v11, %v1205_v41  ;;  %v242_v43 = vsub.f32 %v104_v11, %v1207_v42  ;;  %v1246_v51 = vadd.f32 %v355_v4, %v352_v14  ;;  %v251_v61 = vsub.f32 %v1197_v19, %v1187_v3  ;;  %v138_v19 = vpop.permute.xlu1 %137 }
  0xcf   :  { %v414_v15 = vrot.slane %v413_v6, 4  ;;  %v423_v17 = vrot.slane %v422_v9, 4  ;;  %v432_v20 = vrot.slane %v431_v10, 4  ;;  %v336_v49 = vand.u32 2147483647, %v240_v28 }
  0xd0   :  { %v337_v50 = vand.u32 2147483647, %v241_v32  ;;  %v338_v56 = vand.u32 2147483647, %v242_v43  ;;  %v270_v1 = vsub.f32 %v1212_v46, %v1161_v34  ;;  %v347_v16 = vand.u32 2147483647, %v251_v61 }
  0xd1   :  { %v415_v23 = vadd.f32 %v414_v15, %v413_v6  ;;  %v424_v24 = vadd.f32 %v423_v17, %v422_v9  ;;  %v433_v30 = vadd.f32 %v432_v20, %v431_v10  ;;  %v440_v59 = vadd.f32 %v439_v47, %v336_v49  ;;  %v1256_v15 = vpop.permute.xlu0 %167 }
  0xd2   :  { %v449_v60 = vadd.f32 %v448_v48, %v337_v50  ;;  %v458_v2 = vadd.f32 %v457_v12, %v338_v56  ;;  %v271_v10 = vsub.f32 %v1212_v46, %v1163_v35  ;;  %v272_v48 = vsub.f32 %v1212_v46, %v1166_v37 }
  0xd3   :  { %v416_v40 = vrot.slane %v415_v23, 2  ;;  %v425_v44 = vrot.slane %v424_v24, 2  ;;  %v434_v45 = vrot.slane %v433_v30, 2  ;;  %v441_v6 = vrot.slane %v440_v59, 4 }
  0xd4   :  { %v450_v4 = vrot.slane %v449_v60, 4  ;;  %v459_v11 = vrot.slane %v458_v2, 4  ;;  %v346_v12 = vand.u32 2147483647, %v250_v18  ;;  %v366_v0 = vand.u32 2147483647, %v270_v1 }
  0xd5   :  { %v417_v55 = vadd.f32 %v416_v40, %v415_v23  ;;  %v426_v57 = vadd.f32 %v425_v44, %v424_v24  ;;  %v435_v58 = vadd.f32 %v434_v45, %v433_v30  ;;  %v442_v13 = vadd.f32 %v441_v6, %v440_v59  ;;  %v123_v61 = vpop.permute.xlu0 %122 }
  0xd6   :  { %v451_v14 = vadd.f32 %v450_v4, %v449_v60  ;;  %v460_v20 = vadd.f32 %v459_v11, %v458_v2  ;;  %v367_v32 = vand.u32 2147483647, %v271_v10  ;;  %v261_v40 = vsub.f32 %v138_v19, %v1176_v53 }
  0xd7   :  { %v418_v62 = vrot.slane %v417_v55, 1  ;;  %v427_v63 = vrot.slane %v426_v57, 1  ;;  %v436_v5 = vrot.slane %v435_v58, 1  ;;  %v443_v28 = vrot.slane %v442_v13, 2 }
  0xd8   :  { %v452_v24 = vrot.slane %v451_v14, 2  ;;  %v461_v43 = vrot.slane %v460_v20, 2  ;;  %v368_v44 = vand.u32 2147483647, %v272_v48  ;;  %v262_v46 = vsub.f32 %v138_v19, %v1178_v54 }
  0xd9   :  { %v419_v9 = vadd.f32 %v418_v62, %v417_v55  ;;  %v428_v47 = vadd.f32 %v427_v63, %v426_v57  ;;  %v437_v17 = vadd.f32 %v436_v5, %v435_v58  ;;  %v444_v45 = vadd.f32 %v443_v28, %v442_v13 }
  0xda   :  { %v453_v49 = vadd.f32 %v452_v24, %v451_v14  ;;  %v1261_v50 = vadd.f32 %v1227_v7, %v353_v21  ;;  %v466_v18 = vadd.f32 %v1201_v33, %v345_v8  ;;  %v475_v55 = vadd.f32 %v1203_v36, %v346_v12  ;;  %v172_v7 = vpop.permute.xlu1 %171 }
  0xdb   :  { %v627_v23 = vsub.f32 9.0, %v419_v9  ;;  %v628_v30 = vsub.f32 9.0, %v428_v47  ;;  %v629_v56 = vsub.f32 9.0, %v437_v17  ;;  %v445_v58 = vrot.slane %v444_v45, 1 }
  0xdc   :  { %v454_v59 = vrot.slane %v453_v49, 1  ;;  %v462_v60 = vadd.f32 %v461_v43, %v460_v20  ;;  %v484_v62 = vadd.f32 %v1209_v39, %v347_v16  ;;  %v1267_v2 = vadd.f32 %v366_v0, %v1235_v22 }
  0xdd   :  { %v869_v57 = vmul.f32 -1.442695, %v627_v23  ;;  %v870_v1 = vmul.f32 -1.442695, %v628_v30  ;;  %v1270_v63 = vadd.f32 %v367_v32, %v1238_v29  ;;  %v1272_v21 = vadd.f32 %v368_v44, %v365_v52 }
  0xde   :  { %v263_v33 = vsub.f32 %v138_v19, %v1187_v3  ;;  %v357_v36 = vand.u32 2147483647, %v261_v40  ;;  %v358_v5 = vand.u32 2147483647, %v262_v46  ;;  %v871_v6 = vmul.f32 -1.442695, %v629_v56  ;;  %v157_v0 = vpop.permute.xlu1 %156 }
  0xdf   :  { %v446_v4 = vadd.f32 %v445_v58, %v444_v45  ;;  %v252_v8 = vsub.f32 %v123_v61, %v1199_v31  ;;  %v253_v39 = vsub.f32 %v123_v61, %v1205_v41  ;;  %899 = vpow2.f32 %v869_v57 }
  0xe0   :  { %v455_v9 = vadd.f32 %v454_v59, %v453_v49  ;;  %v463_v22 = vrot.slane %v462_v60, 1  ;;  %v282_v10 = vsub.f32 %v172_v7, %v1161_v34  ;;  %901 = vpow2.f32 %v870_v1 }
  0xe1   :  { %v283_v29 = vsub.f32 %v172_v7, %v1163_v35  ;;  %v254_v52 = vsub.f32 %v123_v61, %v1207_v42  ;;  %v348_v11 = vand.u32 2147483647, %v252_v8  ;;  %v359_v47 = vand.u32 2147483647, %v263_v33 }
  0xe2   :  { %v1281_v48 = vadd.f32 %v1241_v38, %v357_v36  ;;  %v1284_v19 = vadd.f32 %v1246_v51, %v358_v5  ;;  %v284_v13 = vsub.f32 %v172_v7, %v1166_v37  ;;  %903 = vpow2.f32 %v871_v6  ;;  %v191_v5 = vpop.permute.xlu1 %190  ;;  %v187_v6 = vpop.permute.xlu0 %186 }
  0xe3   :  { %v630_v14 = vsub.f32 9.0, %v446_v4  ;;  %v349_v12 = vand.u32 2147483647, %v253_v39  ;;  %v350_v16 = vand.u32 2147483647, %v254_v52  ;;  %v464_v17 = vadd.f32 %v463_v22, %v462_v60 }
  0xe4   :  { %v631_v20 = vsub.f32 9.0, %v455_v9  ;;  %v378_v23 = vand.u32 2147483647, %v282_v10  ;;  %v467_v28 = vadd.f32 %v466_v18, %v348_v11  ;;  %v379_v24 = vand.u32 2147483647, %v283_v29 }
  0xe5   :  { %v279_v30 = vsub.f32 %v1256_v15, %v1151_v25  ;;  %v476_v38 = vadd.f32 %v475_v55, %v349_v12  ;;  %v485_v32 = vadd.f32 %v484_v62, %v350_v16  ;;  %v380_v40 = vand.u32 2147483647, %v284_v13 }
  0xe6   :  { %v280_v51 = vsub.f32 %v1256_v15, %v1153_v26  ;;  %v281_v43 = vsub.f32 %v1256_v15, %v1155_v27  ;;  %v468_v44 = vrot.slane %v467_v28, 4  ;;  %v872_v46 = vmul.f32 -1.442695, %v630_v14 }
  0xe7   :  { %v273_v45 = vsub.f32 %v157_v0, %v1176_v53  ;;  %v477_v49 = vrot.slane %v476_v38, 4  ;;  %v486_v56 = vrot.slane %v485_v32, 4  ;;  %v632_v18 = vsub.f32 9.0, %v464_v17 }
  0xe8   :  { %v873_v57 = vmul.f32 -1.442695, %v631_v20  ;;  %v274_v58 = vsub.f32 %v157_v0, %v1178_v54  ;;  %v469_v59 = vadd.f32 %v468_v44, %v467_v28  ;;  %v375_v55 = vand.u32 2147483647, %v279_v30 }
  0xe9   :  { %v275_v60 = vsub.f32 %v157_v0, %v1187_v3  ;;  %v478_v61 = vadd.f32 %v477_v49, %v476_v38  ;;  %v487_v62 = vadd.f32 %v486_v56, %v485_v32  ;;  %v900_v1 = vpop.eup %899  ;;  %v1297_v7 = vadd.f32 %v1261_v50, %v359_v47 }
  0xea   :  { %v376_v15 = vand.u32 2147483647, %v280_v51  ;;  %v377_v33 = vand.u32 2147483647, %v281_v43  ;;  %v470_v36 = vrot.slane %v469_v59, 2  ;;  %v902_v4 = vpop.eup %901  ;;  %905 = vpow2.f32 %v872_v46  ;;  %v142_v43 = vpop.permute.xlu0 %141 }
  0xeb   :  { %v369_v8 = vand.u32 2147483647, %v273_v45  ;;  %v479_v39 = vrot.slane %v478_v61, 2  ;;  %v488_v9 = vrot.slane %v487_v62, 2  ;;  %907 = vpow2.f32 %v873_v57 }
  0xec   :  { %v874_v22 = vmul.f32 -1.442695, %v632_v18  ;;  %v370_v10 = vand.u32 2147483647, %v274_v58  ;;  %v471_v29 = vadd.f32 %v470_v36, %v469_v59  ;;  %v904_v52 = vpop.eup %903  ;;  %v723_v11 = vadd.f32 1.0, %v900_v1 }
  0xed   :  { %v371_v13 = vand.u32 2147483647, %v275_v60  ;;  %v480_v14 = vadd.f32 %v479_v39, %v478_v61  ;;  %v294_v50 = vsub.f32 %v191_v5, %v1161_v34  ;;  %v724_v47 = vadd.f32 1.0, %v902_v4 }
  0xee   :  { %v472_v12 = vrot.slane %v471_v29, 1  ;;  %v489_v16 = vadd.f32 %v488_v9, %v487_v62  ;;  %v295_v17 = vsub.f32 %v191_v5, %v1163_v35  ;;  %v1301_v20 = vadd.f32 %v378_v23, %v375_v55 }
  0xef   :  { %v1303_v0 = vadd.f32 %v379_v24, %v376_v15  ;;  %v1305_v28 = vadd.f32 %v380_v40, %v377_v33  ;;  %v1308_v30 = vadd.f32 %v1267_v2, %v369_v8  ;;  %v725_v38 = vadd.f32 1.0, %v904_v52  ;;  %v176_v2 = vpop.permute.xlu1 %175 }
  0xf0   :  { %909 = vpow2.f32 %v874_v22  ;;  %v1311_v32 = vadd.f32 %v1270_v63, %v370_v10  ;;  %v296_v51 = vsub.f32 %v191_v5, %v1166_v37  ;;  %v1315_v44 = vadd.f32 %v1272_v21, %v371_v13 }
  0xf1   :  { %911 = vrcp.f32 %v723_v11  ;;  %v481_v23 = vrot.slane %v480_v14, 1  ;;  %v390_v24 = vand.u32 2147483647, %v294_v50  ;;  %v473_v40 = vadd.f32 %v472_v12, %v471_v29 }
  0xf2   :  { %913 = vrcp.f32 %v724_v47  ;;  %v490_v46 = vrot.slane %v489_v16, 1  ;;  %v391_v45 = vand.u32 2147483647, %v295_v17  ;;  %v291_v49 = vsub.f32 %v187_v6, %v1151_v25 }
  0xf3   :  { %v292_v56 = vsub.f32 %v187_v6, %v1153_v26  ;;  %v293_v63 = vsub.f32 %v187_v6, %v1155_v27  ;;  %v264_v18 = vsub.f32 %v142_v43, %v1199_v31  ;;  %915 = vrcp.f32 %v725_v38  ;;  %v1325_v6 = vpop.permute.xlu0 %205  ;;  %v210_v47 = vpop.permute.xlu1 %209 }
  0xf4   :  { %v392_v57 = vand.u32 2147483647, %v296_v51  ;;  %v265_v21 = vsub.f32 %v142_v43, %v1205_v41  ;;  %v266_v58 = vsub.f32 %v142_v43, %v1207_v42  ;;  %v906_v59 = vpop.eup %905  ;;  %v482_v55 = vadd.f32 %v481_v23, %v480_v14 }
  0xf5   :  { %v285_v60 = vsub.f32 %v176_v2, %v1176_v53  ;;  %v286_v61 = vsub.f32 %v176_v2, %v1178_v54  ;;  %v360_v62 = vand.u32 2147483647, %v264_v18  ;;  %v908_v1 = vpop.eup %907  ;;  %v491_v15 = vadd.f32 %v490_v46, %v489_v16 }
  0xf6   :  { %v633_v33 = vsub.f32 9.0, %v473_v40  ;;  %v361_v36 = vand.u32 2147483647, %v265_v21  ;;  %v362_v5 = vand.u32 2147483647, %v266_v58  ;;  %v726_v22 = vadd.f32 1.0, %v906_v59 }
  0xf7   :  { %v387_v4 = vand.u32 2147483647, %v291_v49  ;;  %v388_v8 = vand.u32 2147483647, %v292_v56  ;;  %v389_v39 = vand.u32 2147483647, %v293_v63  ;;  %v494_v9 = vadd.f32 %v1281_v48, %v360_v62  ;;  %v161_v56 = vpop.permute.xlu0 %160 }
  0xf8   :  { %v287_v10 = vsub.f32 %v176_v2, %v1187_v3  ;;  %v503_v29 = vadd.f32 %v1284_v19, %v361_v36  ;;  %v512_v52 = vadd.f32 %v1297_v7, %v362_v5  ;;  %v727_v11 = vadd.f32 1.0, %v908_v1 }
  0xf9   :  { %v381_v13 = vand.u32 2147483647, %v285_v60  ;;  %v382_v14 = vand.u32 2147483647, %v286_v61  ;;  %v495_v50 = vrot.slane %v494_v9, 4  ;;  %v634_v16 = vsub.f32 9.0, %v482_v55  ;;  %v195_v60 = vpop.permute.xlu1 %194 }
  0xfa   :  { %v910_v12 = vpop.eup %909  ;;  %v635_v17 = vsub.f32 9.0, %v491_v15  ;;  %v875_v38 = vmul.f32 -1.442695, %v633_v33  ;;  %v504_v51 = vrot.slane %v503_v29, 4  ;;  %v1333_v48 = vadd.f32 %v390_v24, %v387_v4 }
  0xfb   :  { %v1331_v43 = vpop.eup %911  ;;  %v1335_v23 = vadd.f32 %v391_v45, %v388_v8  ;;  %v1337_v40 = vadd.f32 %v392_v57, %v389_v39  ;;  %v513_v19 = vrot.slane %v512_v52, 4  ;;  %917 = vrcp.f32 %v726_v22 }
  0xfc   :  { %v1339_v7 = vpop.eup %913  ;;  %v383_v46 = vand.u32 2147483647, %v287_v10  ;;  %v496_v2 = vadd.f32 %v495_v50, %v494_v9  ;;  %v505_v49 = vadd.f32 %v504_v51, %v503_v29  ;;  %v728_v63 = vadd.f32 1.0, %v910_v12 }
  0xfd   :  { %919 = vrcp.f32 %v727_v11  ;;  %v1342_v18 = vadd.f32 %v1301_v20, %v381_v13  ;;  %v1345_v24 = vadd.f32 %v1303_v0, %v382_v14  ;;  %v1347_v45 = vpop.eup %915  ;;  %v876_v57 = vmul.f32 -1.442695, %v634_v16  ;;  %v214_v14 = vpop.permute.xlu1 %213 }
  0xfe   :  { %921 = vpow2.f32 %v875_v38  ;;  %v877_v21 = vmul.f32 -1.442695, %v635_v17  ;;  %v306_v58 = vsub.f32 %v210_v47, %v1161_v34  ;;  %v514_v59 = vadd.f32 %v513_v19, %v512_v52 }
  0xff   :  { %v307_v55 = vsub.f32 %v210_v47, %v1163_v35  ;;  %v276_v61 = vsub.f32 %v161_v56, %v1199_v31  ;;  %v277_v62 = vsub.f32 %v161_v56, %v1205_v41  ;;  %v497_v20 = vrot.slane %v496_v2, 2 }
 0x100   :  { %v506_v1 = vrot.slane %v505_v49, 2  ;;  %v308_v0 = vsub.f32 %v210_v47, %v1166_v37  ;;  %v303_v15 = vsub.f32 %v1325_v6, %v1151_v25  ;;  %v304_v33 = vsub.f32 %v1325_v6, %v1153_v26 }
 0x101   :  { %v305_v34 = vsub.f32 %v1325_v6, %v1155_v27  ;;  %v278_v35 = vsub.f32 %v161_v56, %v1207_v42  ;;  %v372_v36 = vand.u32 2147483647, %v276_v61  ;;  %v402_v5 = vand.u32 2147483647, %v306_v58 }
 0x102   :  { %v297_v4 = vsub.f32 %v195_v60, %v1176_v53  ;;  %v298_v8 = vsub.f32 %v195_v60, %v1178_v54  ;;  %v373_v39 = vand.u32 2147483647, %v277_v62  ;;  %v515_v9 = vrot.slane %v514_v59, 2 }
 0x103   :  { %v403_v37 = vand.u32 2147483647, %v307_v55  ;;  %v299_v22 = vsub.f32 %v195_v60, %v1187_v3  ;;  %v374_v25 = vand.u32 2147483647, %v278_v35  ;;  %v498_v10 = vadd.f32 %v497_v20, %v496_v2 }
 0x104   :  { %v507_v29 = vadd.f32 %v506_v1, %v505_v49  ;;  %v404_v26 = vand.u32 2147483647, %v308_v0  ;;  %v521_v52 = vadd.f32 %v1308_v30, %v372_v36  ;;  %v399_v27 = vand.u32 2147483647, %v303_v15 }
 0x105   :  { %v400_v6 = vand.u32 2147483647, %v304_v33  ;;  %v401_v11 = vand.u32 2147483647, %v305_v34  ;;  %v530_v13 = vadd.f32 %v1311_v32, %v373_v39  ;;  %v1366_v50 = vpop.eup %917  ;;  %v565_v47 = vadd.f32 %v1305_v28, %v383_v46  ;;  %v180_v28 = vpop.permute.xlu0 %179 }
 0x106   :  { %v393_v12 = vand.u32 2147483647, %v297_v4  ;;  %v394_v16 = vand.u32 2147483647, %v298_v8  ;;  %v539_v17 = vadd.f32 %v1315_v44, %v374_v25  ;;  %923 = vrcp.f32 %v728_v63 }
 0x107   :  { %v1370_v38 = vpop.eup %919  ;;  %v516_v51 = vadd.f32 %v515_v9, %v514_v59  ;;  %v395_v19 = vand.u32 2147483647, %v299_v22  ;;  %v522_v30 = vrot.slane %v521_v52, 4  ;;  %925 = vpow2.f32 %v876_v57 }
 0x108   :  { %v922_v2 = vpop.eup %921  ;;  %v499_v49 = vrot.slane %v498_v10, 1  ;;  %v508_v56 = vrot.slane %v507_v29, 1  ;;  %v531_v32 = vrot.slane %v530_v13, 4  ;;  %927 = vpow2.f32 %v877_v21  ;;  %v218_v21 = vpop.permute.xlu1 %217 }
 0x109   :  { %v600_v58 = vadd.f32 %v402_v5, %v399_v27  ;;  %v609_v55 = vadd.f32 %v403_v37, %v400_v6  ;;  %v618_v60 = vadd.f32 %v404_v26, %v401_v11  ;;  %v1373_v46 = vadd.f32 %v1333_v48, %v393_v12 }
 0x10a   :  { %v1376_v44 = vadd.f32 %v1335_v23, %v394_v16  ;;  %v540_v63 = vrot.slane %v539_v17, 4  ;;  %v309_v59 = vsub.f32 %v214_v14, %v1176_v53  ;;  %v729_v61 = vadd.f32 1.0, %v922_v2 }
 0x10b   :  { %v517_v62 = vrot.slane %v516_v51, 1  ;;  %v1380_v57 = vadd.f32 %v1337_v40, %v395_v19  ;;  %v523_v20 = vadd.f32 %v522_v30, %v521_v52  ;;  %v500_v1 = vadd.f32 %v499_v49, %v498_v10 }
 0x10c   :  { %v1382_v0 = vadd.f32 %v508_v56, %v507_v29  ;;  %v532_v15 = vadd.f32 %v531_v32, %v530_v13  ;;  %v288_v48 = vsub.f32 %v180_v28, %v1199_v31  ;;  %v310_v33 = vsub.f32 %v214_v14, %v1178_v54 }
 0x10d   :  { %v311_v23 = vsub.f32 %v214_v14, %v1187_v3  ;;  %v289_v34 = vsub.f32 %v180_v28, %v1205_v41  ;;  %v290_v53 = vsub.f32 %v180_v28, %v1207_v42  ;;  %v541_v35 = vadd.f32 %v540_v63, %v539_v17 }
 0x10e   :  { %v405_v36 = vand.u32 2147483647, %v309_v59  ;;  %v384_v40 = vand.u32 2147483647, %v288_v48  ;;  %v312_v5 = vsub.f32 %v218_v21, %v1199_v31  ;;  %v524_v4 = vrot.slane %v523_v20, 2 }
 0x10f   :  { %v385_v8 = vand.u32 2147483647, %v289_v34  ;;  %v386_v39 = vand.u32 2147483647, %v290_v53  ;;  %v313_v9 = vsub.f32 %v218_v21, %v1205_v41  ;;  %v533_v37 = vrot.slane %v532_v15, 2 }
 0x110   :  { %v548_v22 = vadd.f32 %v1342_v18, %v384_v40  ;;  %v314_v54 = vsub.f32 %v218_v21, %v1207_v42  ;;  %v408_v3 = vand.u32 2147483647, %v312_v5  ;;  %v1393_v25 = vpop.eup %923  ;;  %v518_v10 = vadd.f32 %v517_v62, %v516_v51  ;;  %v199_v40 = vpop.permute.xlu0 %198 }
 0x111   :  { %v406_v29 = vand.u32 2147483647, %v310_v33  ;;  %v557_v26 = vadd.f32 %v1345_v24, %v385_v8  ;;  %v566_v52 = vadd.f32 %v565_v47, %v386_v39  ;;  %v1396_v27 = vpop.eup %925  ;;  %v542_v6 = vrot.slane %v541_v35, 2 }
 0x112   :  { %v407_v11 = vand.u32 2147483647, %v311_v23  ;;  %v601_v13 = vadd.f32 %v600_v58, %v405_v36  ;;  %v549_v14 = vrot.slane %v548_v22, 4  ;;  %v1398_v12 = vpop.eup %927  ;;  %v525_v16 = vadd.f32 %v524_v4, %v523_v20 }
 0x113   :  { %v558_v18 = vrot.slane %v557_v26, 4  ;;  %v567_v17 = vrot.slane %v566_v52, 4  ;;  %v409_v19 = vand.u32 2147483647, %v313_v9  ;;  %v534_v30 = vadd.f32 %v533_v37, %v532_v15 }
 0x114   :  { %v550_v2 = vadd.f32 %v549_v14, %v548_v22  ;;  %v410_v49 = vand.u32 2147483647, %v314_v54  ;;  %v602_v51 = vadd.f32 %v601_v13, %v408_v3  ;;  %v636_v56 = vsub.f32 9.0, %v500_v1 }
 0x115   :  { %v637_v24 = vsub.f32 9.0, %v1382_v0  ;;  %v610_v47 = vadd.f32 %v609_v55, %v406_v29  ;;  %v559_v32 = vadd.f32 %v558_v18, %v557_v26  ;;  %v543_v28 = vadd.f32 %v542_v6, %v541_v35 }
 0x116   :  { %v619_v63 = vadd.f32 %v618_v60, %v407_v11  ;;  %v551_v59 = vrot.slane %v550_v2, 2  ;;  %v568_v58 = vadd.f32 %v567_v17, %v566_v52  ;;  %v526_v62 = vrot.slane %v525_v16, 1 }
 0x117   :  { %v560_v21 = vrot.slane %v559_v32, 2  ;;  %v603_v48 = vrot.slane %v602_v51, 4  ;;  %v611_v20 = vadd.f32 %v610_v47, %v409_v19  ;;  %929 = vrcp.f32 %v729_v61 }
 0x118   :  { %v535_v33 = vrot.slane %v534_v30, 1  ;;  %v552_v23 = vadd.f32 %v551_v59, %v550_v2  ;;  %v620_v15 = vadd.f32 %v619_v63, %v410_v49  ;;  %v638_v34 = vsub.f32 9.0, %v518_v10 }
 0x119   :  { %v561_v53 = vadd.f32 %v560_v21, %v559_v32  ;;  %v604_v36 = vadd.f32 %v603_v48, %v602_v51  ;;  %v612_v1 = vrot.slane %v611_v20, 4  ;;  %v878_v0 = vmul.f32 -1.442695, %v636_v56 }
 0x11a   :  { %v544_v55 = vrot.slane %v543_v28, 1  ;;  %v569_v5 = vrot.slane %v568_v58, 2  ;;  %v621_v35 = vrot.slane %v620_v15, 4  ;;  %v879_v60 = vmul.f32 -1.442695, %v637_v24 }
 0x11b   :  { %v527_v4 = vadd.f32 %v526_v62, %v525_v16  ;;  %v605_v8 = vrot.slane %v604_v36, 2  ;;  %v613_v39 = vadd.f32 %v612_v1, %v611_v20  ;;  %v536_v9 = vadd.f32 %v535_v33, %v534_v30 }
 0x11c   :  { %v553_v37 = vrot.slane %v552_v23, 1  ;;  %v622_v22 = vadd.f32 %v621_v35, %v620_v15  ;;  %v300_v61 = vsub.f32 %v199_v40, %v1199_v31  ;;  %v562_v54 = vrot.slane %v561_v53, 1 }
 0x11d   :  { %v606_v3 = vadd.f32 %v605_v8, %v604_v36  ;;  %v614_v10 = vrot.slane %v613_v39, 2  ;;  %v301_v29 = vsub.f32 %v199_v40, %v1205_v41  ;;  %v880_v26 = vmul.f32 -1.442695, %v638_v34 }
 0x11e   :  { %v545_v52 = vadd.f32 %v544_v55, %v543_v28  ;;  %v570_v6 = vadd.f32 %v569_v5, %v568_v58  ;;  %v623_v11 = vrot.slane %v622_v22, 2  ;;  %v302_v16 = vsub.f32 %v199_v40, %v1207_v42 }
 0x11f   :  { %v607_v13 = vrot.slane %v606_v3, 1  ;;  %v615_v14 = vadd.f32 %v614_v10, %v613_v39  ;;  %v396_v18 = vand.u32 2147483647, %v300_v61  ;;  %v639_v17 = vsub.f32 9.0, %v527_v4 }
 0x120   :  { %v554_v19 = vadd.f32 %v553_v37, %v552_v23  ;;  %v624_v30 = vadd.f32 %v623_v11, %v622_v22  ;;  %v397_v2 = vand.u32 2147483647, %v301_v29  ;;  %931 = vpow2.f32 %v878_v0 }
 0x121   :  { %v640_v31 = vsub.f32 9.0, %v536_v9  ;;  %v563_v49 = vadd.f32 %v562_v54, %v561_v53  ;;  %v616_v51 = vrot.slane %v615_v14, 1  ;;  %v1404_v56 = vpop.eup %929  ;;  %v641_v41 = vsub.f32 9.0, %v545_v52 }
 0x122   :  { %v571_v24 = vrot.slane %v570_v6, 1  ;;  %v608_v47 = vadd.f32 %v607_v13, %v606_v3  ;;  %v575_v32 = vadd.f32 %v1373_v46, %v396_v18  ;;  %v625_v63 = vrot.slane %v624_v30, 1 }
 0x123   :  { %v617_v28 = vadd.f32 %v616_v51, %v615_v14  ;;  %v398_v59 = vand.u32 2147483647, %v302_v16  ;;  %v584_v42 = vadd.f32 %v1376_v44, %v397_v2  ;;  %933 = vpow2.f32 %v879_v60 }
 0x124   :  { %v881_v58 = vmul.f32 -1.442695, %v639_v17  ;;  %v642_v62 = vsub.f32 9.0, %v554_v19  ;;  %v576_v21 = vrot.slane %v575_v32, 4  ;;  %935 = vpow2.f32 %v880_v26 }
 0x125   :  { %v882_v48 = vmul.f32 -1.442695, %v640_v31  ;;  %v643_v20 = vsub.f32 9.0, %v563_v49  ;;  %v585_v33 = vrot.slane %v584_v42, 4  ;;  %v883_v23 = vmul.f32 -1.442695, %v641_v41 }
 0x126   :  { %v572_v15 = vadd.f32 %v571_v24, %v570_v6  ;;  %v648_v34 = vsub.f32 9.0, %v608_v47  ;;  %v577_v53 = vadd.f32 %v576_v21, %v575_v32  ;;  %v626_v36 = vadd.f32 %v625_v63, %v624_v30 }
 0x127   :  { %v649_v1 = vsub.f32 9.0, %v617_v28  ;;  %v586_v46 = vadd.f32 %v585_v33, %v584_v42  ;;  %v593_v40 = vadd.f32 %v1380_v57, %v398_v59  ;;  %937 = vpow2.f32 %v881_v58 }
 0x128   :  { %v884_v0 = vmul.f32 -1.442695, %v642_v62  ;;  %v578_v44 = vrot.slane %v577_v53, 2  ;;  %939 = vpow2.f32 %v882_v48  ;;  %v885_v55 = vmul.f32 -1.442695, %v643_v20 }
 0x129   :  { %v587_v5 = vrot.slane %v586_v46, 2  ;;  %v594_v35 = vrot.slane %v593_v40, 4  ;;  %941 = vpow2.f32 %v883_v23  ;;  %v644_v60 = vsub.f32 9.0, %v572_v15 }
 0x12a   :  { %v890_v4 = vmul.f32 -1.442695, %v648_v34  ;;  %v579_v8 = vadd.f32 %v578_v44, %v577_v53  ;;  %v932_v39 = vpop.eup %931  ;;  %v650_v9 = vsub.f32 9.0, %v626_v36  ;;  %v891_v37 = vmul.f32 -1.442695, %v649_v1 }
 0x12b   :  { %v588_v22 = vadd.f32 %v587_v5, %v586_v46  ;;  %v595_v61 = vadd.f32 %v594_v35, %v593_v40  ;;  %v730_v54 = vadd.f32 1.0, %v1396_v27  ;;  %943 = vpow2.f32 %v884_v0 }
 0x12c   :  { %v580_v57 = vrot.slane %v579_v8, 1  ;;  %v731_v3 = vadd.f32 1.0, %v1398_v12  ;;  %945 = vpow2.f32 %v885_v55  ;;  %v886_v52 = vmul.f32 -1.442695, %v644_v60 }
 0x12d   :  { %v589_v10 = vrot.slane %v588_v22, 1  ;;  %v596_v29 = vrot.slane %v595_v61, 2  ;;  %v934_v26 = vpop.eup %933  ;;  %947 = vpow2.f32 %v890_v4  ;;  %v892_v13 = vmul.f32 -1.442695, %v650_v9 }
 0x12e   :  { %v581_v6 = vadd.f32 %v580_v57, %v579_v8  ;;  %v936_v11 = vpop.eup %935  ;;  %949 = vpow2.f32 %v891_v37  ;;  %v732_v30 = vadd.f32 1.0, %v932_v39  ;;  %v733_v31 = vadd.f32 1.0, %v934_v26 }
 0x12f   :  { %v590_v14 = vadd.f32 %v589_v10, %v588_v22  ;;  %v597_v16 = vadd.f32 %v596_v29, %v595_v61  ;;  %951 = vrcp.f32 %v730_v54  ;;  %v734_v24 = vadd.f32 1.0, %v936_v11 }
 0x130   :  { %v645_v18 = vsub.f32 9.0, %v581_v6  ;;  %953 = vrcp.f32 %v731_v3  ;;  %v820_v61 = vsel %vm819_vm0, %v1366_v50, %v1331_v43  ;;  %v833_v3 = vsel %vm819_vm0, %v1370_v38, %v1339_v7 }
 0x131   :  { %v598_v27 = vrot.slane %v597_v16, 1  ;;  %v646_v17 = vsub.f32 9.0, %v590_v14  ;;  %v938_v19 = vpop.eup %937  ;;  %955 = vpow2.f32 %v886_v52  ;;  %v822_v57 = vsel %vm821_vm1, %v1404_v56, %v820_v61 }
 0x132   :  { %v887_v12 = vmul.f32 -1.442695, %v645_v18  ;;  %v940_v2 = vpop.eup %939  ;;  %957 = vpow2.f32 %v892_v13  ;;  %v735_v28 = vadd.f32 1.0, %v938_v19  ;;  %v840_v14 = vsel %vm819_vm0, %v1393_v25, %v1347_v45 }
 0x133   :  { %v599_v49 = vadd.f32 %v598_v27, %v597_v16  ;;  %v888_v51 = vmul.f32 -1.442695, %v646_v17  ;;  %v942_v41 = vpop.eup %941  ;;  %v736_v59 = vadd.f32 1.0, %v940_v2 }
 0x134   :  { %959 = vpow2.f32 %v887_v12  ;;  %v737_v62 = vadd.f32 1.0, %v942_v41 }
 0x135   :  { %v647_v47 = vsub.f32 9.0, %v599_v49  ;;  %961 = vpow2.f32 %v888_v51  ;;  %v944_v32 = vpop.eup %943 }
 0x136   :  { %963 = vrcp.f32 %v732_v30  ;;  %v946_v63 = vpop.eup %945  ;;  %v738_v48 = vadd.f32 1.0, %v944_v32 }
 0x137   :  { %965 = vrcp.f32 %v733_v31  ;;  %v889_v42 = vmul.f32 -1.442695, %v647_v47  ;;  %v948_v58 = vpop.eup %947  ;;  %v739_v33 = vadd.f32 1.0, %v946_v63 }
 0x138   :  { %967 = vrcp.f32 %v734_v24  ;;  %v950_v21 = vpop.eup %949  ;;  %v744_v15 = vadd.f32 1.0, %v948_v58 }
 0x139   :  { %969 = vpow2.f32 %v889_v42  ;;  %v952_v20 = vpop.eup %951  ;;  %v745_v53 = vadd.f32 1.0, %v950_v21 }
 0x13a   :  { %971 = vrcp.f32 %v735_v28  ;;  %v954_v23 = vpop.eup %953  ;;  %v834_v26 = vsel %vm821_vm1, %v952_v20, %v833_v3 }
 0x13b   :  { %973 = vrcp.f32 %v736_v59  ;;  %v956_v34 = vpop.eup %955  ;;  %v841_v17 = vsel %vm821_vm1, %v954_v23, %v840_v14 }
 0x13c   :  { %975 = vrcp.f32 %v737_v62  ;;  %v958_v36 = vpop.eup %957  ;;  %v740_v40 = vadd.f32 1.0, %v956_v34 }
 0x13d   :  { %977 = vrcp.f32 %v738_v48  ;;  %v746_v35 = vadd.f32 1.0, %v958_v36 }
 0x13e   :  { %v960_v1 = vpop.eup %959  ;;  %979 = vrcp.f32 %v739_v33 }
 0x13f   :  { %v962_v46 = vpop.eup %961  ;;  %981 = vrcp.f32 %v744_v15  ;;  %v741_v0 = vadd.f32 1.0, %v960_v1 }
 0x140   :  { %v964_v44 = vpop.eup %963  ;;  %983 = vrcp.f32 %v745_v53  ;;  %v742_v55 = vadd.f32 1.0, %v962_v46 }
 0x141   :  { %v966_v5 = vpop.eup %965  ;;  %985 = vrcp.f32 %v741_v0  ;;  %v824_v29 = vsel %vm823_vm2, %v964_v44, %v822_v57 }
 0x142   :  { %v968_v60 = vpop.eup %967  ;;  %987 = vrcp.f32 %v742_v55  ;;  %v835_v43 = vsel %vm823_vm2, %v966_v5, %v834_v26 }
 0x143   :  { %v970_v4 = vpop.eup %969  ;;  %989 = vrcp.f32 %v740_v40  ;;  %v842_v30 = vsel %vm823_vm2, %v968_v60, %v841_v17 }
 0x144   :  { %v972_v8 = vpop.eup %971  ;;  %v743_v39 = vadd.f32 1.0, %v970_v4  ;;  %991 = vrcp.f32 %v746_v35 }
 0x145   :  { %v974_v9 = vpop.eup %973  ;;  %v826_v6 = vsel %vm825_vm3, %v972_v8, %v824_v29 }
 0x146   :  { %v976_v37 = vpop.eup %975  ;;  %993 = vrcp.f32 %v743_v39  ;;  %v836_v11 = vsel %vm825_vm3, %v974_v9, %v835_v43 }
 0x147   :  { %v978_v22 = vpop.eup %977  ;;  %v843_v2 = vsel %vm825_vm3, %v976_v37, %v842_v30 }
 0x148   :  { %v980_v54 = vpop.eup %979  ;;  %v828_v56 = vsel %vm827_vm4, %v978_v22, %v826_v6 }
 0x149   :  { %v982_v10 = vpop.eup %981  ;;  %v837_v38 = vsel %vm827_vm4, %v980_v54, %v836_v11 }
 0x14a   :  { %v984_v52 = vpop.eup %983 }
 0x14b   :  { %v986_v50 = vpop.eup %985 }
 0x14c   :  { %v988_v13 = vpop.eup %987  ;;  %v830_v7 = vsel %vm829_vm5, %v986_v50, %v828_v56 }
 0x14d   :  { %v990_v16 = vpop.eup %989  ;;  %v832_v18 = vsel %vm831_vm6, %v982_v10, %v830_v7  ;;  %v838_v27 = vsel %vm829_vm5, %v988_v13, %v837_v38 }
 0x14e   :  { %v839_v19 = vsel %vm831_vm6, %v984_v52, %v838_v27  ;;  %850 = vst [vmem:[#allocation8] sm:$0xff] %v832_v18  ;;  %v992_v12 = vpop.eup %991  ;;  %v844_v45 = vsel %vm827_vm4, %v990_v16, %v843_v2 }
 0x14f   :  { %851 = vst [vmem:[#allocation8 + $0x8] sm:$0xff] %v839_v19 }
 0x150   :  { %v994_v31 = vpop.eup %993 }
 0x151   :  { %v845_v25 = vsel %vm829_vm5, %v994_v31, %v844_v45 }
 0x152   :  { %v846_v49 = vsel %vm831_vm6, %v992_v12, %v845_v25 }
 0x153   :  { %852 = vst [vmem:[#allocation8 + $0x10] sm:$0xff] %v846_v49 }
 0x154   :  { %1072 = shalt.err (!%p1069_p0)
}
 0x155   :  { %s1073_s25 = scalar_lea.hbm %s1454_s3, 384 }
 0x156   :  { %p1074_p1 = scmp.ne.s32.totalorder %s1454_s3, %s1073_s25  ;;  %p1077_p2 = scmp.lt.u32.totalorder %s1073_s25, %s1454_s3 }
 0x158   :  { %p1079_p3 = pnand %p1077_p2, %p1074_p1 }
 0x15a   :  { %1082 = shalt.err (!%p1079_p3)
}
 0x15b   :  { %862 = dma.vmem_to_hbm [thread:$0]  %s860_s21, 384, %s1454_s3, [#allocation4]  }
 0x15c   :  { %1087 = dma.done.wait [#allocation4], 384  }
 0x15d   :  { %1088 = vsyncadd [#allocation4], 4294966912 }
 0x15e   :  { %866 = vsyncpa [#allocation3], 1 }
 0x15f   :  { %867 = vsyncpa [#allocation6], 1 }
 0x160   :  { %868 = vsyncpa [#allocation4], 1 }

</bundles_post_ra>
